<compile_context>
chip_gen: v7x
topology: tpu7x:2x2x1
jax: 0.10.0
libtpu: 0.0.40
codegen_flags: <defaults>
</compile_context>

<pallas_src>
import numpy as np
import jax
import jax.numpy as jnp
from jax.experimental import pallas as pl
from jax.experimental.pallas import tpu as pltpu


def _sinusoid_table(n_position: int, d_hid: int) -> np.ndarray:
    """Same construction as PositionalEncoding._get_sinusoid_encoding_table."""
    def get_position_angle_vec(position):
        return [position / np.power(10000, 2 * (hid_j // 2) / d_hid)
                for hid_j in range(d_hid)]

    table = np.array([get_position_angle_vec(p) for p in range(n_position)],
                     dtype=np.float64)
    table[:, 0::2] = np.sin(table[:, 0::2])
    table[:, 1::2] = np.cos(table[:, 1::2])
    return table.astype(np.float32)          # (n_position, d_hid)


def _split_f32_to_bf16x3(table_f32: jax.Array) -> jax.Array:
    """Exact-enough (<1 ulp f32) 3-plane bf16 decomposition of an f32 table."""
    x = table_f32.astype(jnp.float32)
    p0 = x.astype(jnp.bfloat16)
    r1 = x - p0.astype(jnp.float32)
    p1 = r1.astype(jnp.bfloat16)
    r2 = r1 - p1.astype(jnp.float32)
    p2 = r2.astype(jnp.bfloat16)
    return jnp.stack([p0, p1, p2], axis=0)   # (3, N, D) bf16


def _round_up(x: int, m: int) -> int:
    return ((x + m - 1) // m) * m


def _choose_block_rows(total_rows: int, d: int, itemsize: int) -> int:
    """Rows per grid step: sized from D only (~2 MiB x/out tiles), multiple of 8,
    up to 1024 rows (>=256 preferred for the 256-wide MXU when rows exist)."""
    budget = 2 << 20
    tm = budget // max(1, d * itemsize)
    tm = max(8, min(tm, 1024))
    tm = (tm // 8) * 8
    tm = min(tm, _round_up(total_rows, 8))
    return max(8, tm)


def _choose_table_chunk(n: int, d: int) -> int:
    """Table rows per N-chunk: one (3, tn, D) bf16 chunk ~<= 4 MiB per buffer."""
    budget = 4 << 20
    tn = budget // max(1, 3 * d * 2)
    tn = max(8, (min(tn, 8192) // 8) * 8)
    return min(tn, _round_up(n, 8))


def _vmem_limit_bytes(needed: int) -> int:
    try:
        phys = int(pltpu.get_tpu_info().vmem_capacity_bytes)
    except Exception:
        phys = 64 << 20                      # conservative (v7x per-TensorCore)
    lim = max(int(needed * 1.25) + (8 << 20), 32 << 20)
    cap = max(int(phys * 0.75), int(needed) + (2 << 20))
    return min(lim, cap)


def _add_pos_kernel(x_ref, rank_ref, tbl_ref, o_ref, acc_ref):
    # x_ref:   (TM, D)  in caller dtype
    # rank_ref:(TM, 1)  int32
    # tbl_ref: (3, TN, D) bf16 (3 exact planes of the f32 table, zero-padded rows)
    # acc_ref: (TM, D)  f32 scratch, accumulates the gathered rows across N-chunks
    j = pl.program_id(1)

    @pl.when(j == 0)
    def _init():
        acc_ref[...] = jnp.zeros_like(acc_ref)

    tm = x_ref.shape[0]
    tn = tbl_ref.shape[1]
    idx = rank_ref[...]                                              # (TM, 1) i32
    col = jax.lax.broadcasted_iota(jnp.int32, (tm, tn), 1) + j * tn  # (TM, TN)
    # One-hot is exactly representable in bf16 -> 3 single-pass bf16 MXU dots
    # reconstruct the f32 table row exactly (vs ~6 passes for HIGHEST f32).
    one_hot = jnp.where(idx == col, 1.0, 0.0).astype(jnp.bfloat16)   # (TM, TN)

    g = jnp.dot(one_hot, tbl_ref[0], preferred_element_type=jnp.float32)
    g = g + jnp.dot(one_hot, tbl_ref[1], preferred_element_type=jnp.float32)
    g = g + jnp.dot(one_hot, tbl_ref[2], preferred_element_type=jnp.float32)
    acc_ref[...] += g

    @pl.when(j == pl.num_programs(1) - 1)
    def _finalize():
        o_ref[...] = (x_ref[...].astype(jnp.float32) + acc_ref[...]).astype(o_ref.dtype)


def positional_encoding_forward(enc_input: jax.Array,
                                ranking: jax.Array,
                                pos_table: jax.Array) -> jax.Array:
    """enc_input: (B, S, D); ranking: (B, S) int; pos_table: (N, D) or (1, N, D) f32.
    Returns (1, B, S, D) in enc_input.dtype, matching the PyTorch broadcast result."""
    if pos_table.ndim == 3:
        pos_table = pos_table[0]
    B, S, D = enc_input.shape
    N, Dt = pos_table.shape
    assert D == Dt

    total = B * S
    x_dtype = enc_input.dtype
    itemsize = jnp.dtype(x_dtype).itemsize

    tm = _choose_block_rows(total, D, itemsize)
    tn = _choose_table_chunk(N, D)
    grid_rows = pl.cdiv(total, tm)
    n_chunks = pl.cdiv(N, tn)
    n_pad = n_chunks * tn - N

    # One-time "buffer" prep (analog of register_buffer): exact 3-plane bf16 split,
    # zero-padded along N so partial table chunks never contain garbage rows.
    tbl_planes = _split_f32_to_bf16x3(pos_table)                # (3, N, D) bf16
    if n_pad:
        tbl_planes = jnp.pad(tbl_planes, ((0, 0), (0, n_pad), (0, 0)))

    x_flat = enc_input.reshape(total, D)                        # metadata-only
    rank_2d = ranking.reshape(total, 1).astype(jnp.int32)

    # Explicit VMEM budget: double-buffered x/out/rank/table tiles + f32 acc +
    # one-hot temporaries + headroom.
    x_tile = tm * D * itemsize
    rank_tile = tm * 128 * 4                  # (TM, 1) i32 block lane-pads to 128
    tbl_tile = 3 * tn * D * 2
    acc_bytes = tm * D * 4
    onehot_bytes = tm * tn * 8
    needed = 2 * (2 * x_tile) + 2 * rank_tile + 2 * tbl_tile + acc_bytes + onehot_bytes

    out_flat = pl.pallas_call(
        _add_pos_kernel,
        out_shape=jax.ShapeDtypeStruct((total, D), x_dtype),
        grid=(grid_rows, n_chunks),
        in_specs=[
            # enc_input rows, TM per step (resident across the N-chunk axis)
            pl.BlockSpec((tm, D), lambda i, j: (i, 0)),
            # ranking indices for those rows
            pl.BlockSpec((tm, 1), lambda i, j: (i, 0)),
            # 3-plane bf16 table chunk along N
            pl.BlockSpec((3, tn, D), lambda i, j: (0, j, 0)),
        ],
        out_specs=pl.BlockSpec((tm, D), lambda i, j: (i, 0)),
        scratch_shapes=[pltpu.VMEM((tm, D), jnp.float32)],
        compiler_params=pltpu.CompilerParams(
            dimension_semantics=("parallel", "arbitrary"),
            vmem_limit_bytes=_vmem_limit_bytes(needed)),
    )(x_flat, rank_2d, tbl_planes)

    # PyTorch broadcasting gives a leading singleton dim from pos_table[:, ranking].
    return out_flat.reshape(B, S, D)[None]


if __name__ == "__main__":
    # Small, module-consistent shapes.
    B, S, D, N = 2, 8, 32, 40

    key = jax.random.PRNGKey(0)
    k_x, k_r = jax.random.split(key)
    enc_input = jax.random.normal(k_x, (B, S, D), dtype=jnp.float32)
    ranking = jax.random.randint(k_r, (B, S), 0, N, dtype=jnp.int32)

    pos_table = jnp.asarray(_sinusoid_table(N, D))   # deterministic buffer (N, D)

    out = positional_encoding_forward(enc_input, ranking, pos_table)
    out = jax.block_until_ready(out)

    # Pure-JAX reference of the PyTorch forward.
    ref = (enc_input + pos_table[ranking])[None]     # (1, B, S, D)
    assert out.shape == (1, B, S, D)
    assert np.allclose(np.asarray(out), np.asarray(ref), atol=1e-5, rtol=1e-5)

    print("KERNEL_OK")
</pallas_src>

<mosaic_0001>
module attributes {stable_mosaic.version = 11 : i64} {
  func.func @_add_pos_kernel(%arg0: i32, %arg1: i32, %arg2: memref<16x32xf32, #tpu.memory_space<vmem>>, %arg3: memref<16x1xi32, #tpu.memory_space<vmem>>, %arg4: memref<3x40x32xbf16, #tpu.memory_space<vmem>>, %arg5: memref<16x32xf32, #tpu.memory_space<vmem>>, %arg6: memref<16x32xf32, #tpu.memory_space<vmem>>) attributes {dimension_semantics = [#tpu.dimension_semantics<parallel>, #tpu.dimension_semantics<arbitrary>], iteration_bounds = array<i64: 1, 1>, scalar_prefetch = 0 : i64, scratch_operands = 1 : i64, tpu.core_type = #tpu.core_type<tc>, window_params = [{transform_indices = @transform_0, window_bounds = array<i64: 16, 32>}, {transform_indices = @transform_1, window_bounds = array<i64: 16, 1>}, {transform_indices = @transform_2, window_bounds = array<i64: 3, 40, 32>}, {transform_indices = @transform_3, window_bounds = array<i64: 16, 32>}]} {
    %c0_i32 = arith.constant 0 : i32
    %0 = arith.cmpi eq, %arg1, %c0_i32 : i32
    %1 = arith.extui %0 : i1 to i32
    %c0_i32_0 = arith.constant 0 : i32
    %2 = arith.cmpi ne, %1, %c0_i32_0 : i32
    scf.if %2 {
      %cst_19 = arith.constant 0.000000e+00 : f32
      %31 = vector.broadcast %cst_19 : f32 to vector<16x32xf32>
      %c0_20 = arith.constant 0 : index
      %c0_21 = arith.constant 0 : index
      %32 = vector.load %arg6[%c0_20, %c0_21] : memref<16x32xf32, #tpu.memory_space<vmem>>, vector<16x32xf32>
      tpu.vector_store %arg6[%c0_20, %c0_21], %31 {strides = array<i32>} : memref<16x32xf32, #tpu.memory_space<vmem>>, vector<16x32xf32>,
    } else {
    }
    %c0 = arith.constant 0 : index
    %c0_1 = arith.constant 0 : index
    %3 = vector.load %arg3[%c0, %c0_1] : memref<16x1xi32, #tpu.memory_space<vmem>>, vector<16x1xi32>
    %4 = tpu.iota {dimensions = array<i32: 1>} : vector<16x40xi32>
    %c40_i32 = arith.constant 40 : i32
    %5 = arith.muli %arg1, %c40_i32 : i32
    %6 = vector.broadcast %5 : i32 to vector<16x40xi32>
    %7 = arith.addi %4, %6 : vector<16x40xi32>
    %8 = vector.broadcast %3 : vector<16x1xi32> to vector<16x40xi32>
    %9 = arith.cmpi eq, %8, %7 : vector<16x40xi32>
    %cst = arith.constant 1.000000e+00 : f32
    %cst_2 = arith.constant 0.000000e+00 : f32
    %10 = vector.broadcast %cst : f32 to vector<16x40xf32>
    %11 = vector.broadcast %cst_2 : f32 to vector<16x40xf32>
    %12 = arith.select %9, %10, %11 : vector<16x40xi1>, vector<16x40xf32>
    %13 = arith.truncf %12 : vector<16x40xf32> to vector<16x40xbf16>
    %c0_3 = arith.constant 0 : index
    %c0_4 = arith.constant 0 : index
    %c0_5 = arith.constant 0 : index
    %14 = vector.load %arg4[%c0_3, %c0_4, %c0_5] : memref<3x40x32xbf16, #tpu.memory_space<vmem>>, vector<1x40x32xbf16>
    %15 = vector.shape_cast %14 : vector<1x40x32xbf16> to vector<40x32xbf16>
    %cst_6 = arith.constant dense<0.000000e+00> : vector<16x32xf32>
    %16 = tpu.matmul %13, %15, %cst_6 {dimension_numbers = #tpu.dot_dimension_numbers<[1], [0], [0], [1], [0, 0, 1, 1], [], []>} : vector<16x40xbf16>, vector<40x32xbf16>, vector<16x32xf32> -> vector<16x32xf32>
    %c1 = arith.constant 1 : index
    %c0_7 = arith.constant 0 : index
    %c0_8 = arith.constant 0 : index
    %17 = vector.load %arg4[%c1, %c0_7, %c0_8] : memref<3x40x32xbf16, #tpu.memory_space<vmem>>, vector<1x40x32xbf16>
    %18 = vector.shape_cast %17 : vector<1x40x32xbf16> to vector<40x32xbf16>
    %cst_9 = arith.constant dense<0.000000e+00> : vector<16x32xf32>
    %19 = tpu.matmul %13, %18, %cst_9 {dimension_numbers = #tpu.dot_dimension_numbers<[1], [0], [0], [1], [0, 0, 1, 1], [], []>} : vector<16x40xbf16>, vector<40x32xbf16>, vector<16x32xf32> -> vector<16x32xf32>
    %20 = arith.addf %16, %19 : vector<16x32xf32>
    %c2 = arith.constant 2 : index
    %c0_10 = arith.constant 0 : index
    %c0_11 = arith.constant 0 : index
    %21 = vector.load %arg4[%c2, %c0_10, %c0_11] : memref<3x40x32xbf16, #tpu.memory_space<vmem>>, vector<1x40x32xbf16>
    %22 = vector.shape_cast %21 : vector<1x40x32xbf16> to vector<40x32xbf16>
    %cst_12 = arith.constant dense<0.000000e+00> : vector<16x32xf32>
    %23 = tpu.matmul %13, %22, %cst_12 {dimension_numbers = #tpu.dot_dimension_numbers<[1], [0], [0], [1], [0, 0, 1, 1], [], []>} : vector<16x40xbf16>, vector<40x32xbf16>, vector<16x32xf32> -> vector<16x32xf32>
    %24 = arith.addf %20, %23 : vector<16x32xf32>
    %c0_13 = arith.constant 0 : index
    %c0_14 = arith.constant 0 : index
    %25 = vector.load %arg6[%c0_13, %c0_14] : memref<16x32xf32, #tpu.memory_space<vmem>>, vector<16x32xf32>
    %26 = arith.addf %25, %24 : vector<16x32xf32>
    %c0_15 = arith.constant 0 : index
    %c0_16 = arith.constant 0 : index
    %27 = vector.load %arg6[%c0_15, %c0_16] : memref<16x32xf32, #tpu.memory_space<vmem>>, vector<16x32xf32>
    tpu.vector_store %arg6[%c0_15, %c0_16], %26 {strides = array<i32>} : memref<16x32xf32, #tpu.memory_space<vmem>>, vector<16x32xf32>,
    %c0_i32_17 = arith.constant 0 : i32
    %28 = arith.cmpi eq, %arg1, %c0_i32_17 : i32
    %29 = arith.extui %28 : i1 to i32
    %c0_i32_18 = arith.constant 0 : i32
    %30 = arith.cmpi ne, %29, %c0_i32_18 : i32
    scf.if %30 {
      %c0_19 = arith.constant 0 : index
      %c0_20 = arith.constant 0 : index
      %31 = vector.load %arg2[%c0_19, %c0_20] : memref<16x32xf32, #tpu.memory_space<vmem>>, vector<16x32xf32>
      %c0_21 = arith.constant 0 : index
      %c0_22 = arith.constant 0 : index
      %32 = vector.load %arg6[%c0_21, %c0_22] : memref<16x32xf32, #tpu.memory_space<vmem>>, vector<16x32xf32>
      %33 = arith.addf %31, %32 : vector<16x32xf32>
      %c0_23 = arith.constant 0 : index
      %c0_24 = arith.constant 0 : index
      %34 = vector.load %arg5[%c0_23, %c0_24] : memref<16x32xf32, #tpu.memory_space<vmem>>, vector<16x32xf32>
      tpu.vector_store %arg5[%c0_23, %c0_24], %33 {strides = array<i32>} : memref<16x32xf32, #tpu.memory_space<vmem>>, vector<16x32xf32>,
    } else {
    }
    return
  }
  func.func @transform_0(%arg0: i32, %arg1: i32) -> (i32, i32) {
    %c0_i32 = arith.constant 0 : i32
    %c0_i32_0 = arith.constant 0 : i32
    return %arg0, %c0_i32 : i32, i32
  }
  func.func @transform_1(%arg0: i32, %arg1: i32) -> (i32, i32) {
    %c0_i32 = arith.constant 0 : i32
    %c0_i32_0 = arith.constant 0 : i32
    return %arg0, %c0_i32 : i32, i32
  }
  func.func @transform_2(%arg0: i32, %arg1: i32) -> (i32, i32, i32) {
    %c0_i32 = arith.constant 0 : i32
    %c0_i32_0 = arith.constant 0 : i32
    %c0_i32_1 = arith.constant 0 : i32
    return %c0_i32, %arg1, %c0_i32_0 : i32, i32, i32
  }
  func.func @transform_3(%arg0: i32, %arg1: i32) -> (i32, i32) {
    %c0_i32 = arith.constant 0 : i32
    %c0_i32_0 = arith.constant 0 : i32
    return %arg0, %c0_i32 : i32, i32
  }
}

</mosaic_0001>

<bundles_post_ra>
// kernel: tpu_custom_call.1
= control target key start
LH: loop header
LB: loop body
LE: loop exit
PB: predicated region body
PF: predicated region fallthrough
CT: control target
= control target key end

     0   :  { %v380_v1 = vmov 0   ;;  %v381_v3 = vmov 0.0   ;;  %vm71_vm0 = vcmask 1043456   ;;  %s469_s0 = inlined_call_operand.vmem [shape: f32[16,32], index: 0, kind: input, shape index: {}]   ;;  %s470_s1 = inlined_call_operand.vmem [shape: s32[16,1], index: 1, kind: input, shape index: {}]   ;;  %s471_s2 = inlined_call_operand.vmem [shape: bf16[3,40,32], index: 2, kind: input, shape index: {}]   ;;  %s472_s3 = inlined_call_operand.hbm [shape: f32[16,32], index: 3, kind: output, shape index: {}]  }
   0x1   :  { %v23_v0 = vld [vmem:[%s470_s1] sm:$0xff]  ;;  %346 = vset.pattern.permute.xlu0 %v380_v1  ;;  %v24_v2 = vld [vmem:[%s470_s1 + $0x8] sm:$0xff]  ;;  %310 = vmatprep.subr.bf16.mxu0 %v381_v3  ;;  %v347_v4 = vld [vmem:[%s471_s2 + $0x14] sm:$0xff]  }
   0x2   :  { %31 = vperm.xlu0 %346, %v23_v0   ;;  %320 = vmatprep.subr.bf16.mxu1 %v381_v3  ;;  %v348_v5 = vld [vmem:[%s471_s2] sm:$0xff]   ;;  %v350_v7 = vld [vmem:[%s471_s2 + $0x8] sm:$0xff]   ;;  %v352_v9 = vld [vmem:[%s471_s2 + $0x10] ss:$0 sps:$4 sm:$0xff]  }
   0x3   :  { %311 = vmatpush3.bf16.msra.mxu0 %v347_v4  ;;  %v349_v6 = vld [vmem:[%s471_s2 + $0x1c] sm:$0xff]   ;;  %321 = vmatpush3.bf16.msra.mxu1 %v348_v5  ;;  %v351_v8 = vld [vmem:[%s471_s2 + $0x24] ss:$0 sps:$4 sm:$0xff]  }
   0x4   :  { %312 = vmatprep.subr.bf16.mxu0 %v381_v3  ;;  %322 = vmatprep.subr.bf16.mxu1 %v381_v3  ;;  %v73_v10 = vsel %vm71_vm0, %v351_v8, 0 }
   0x6   :  { %34 = vperm.xlu0 %346, %v24_v2  }
   0x7   :  { %313 = vmatpush3.bf16.msra.mxu0 %v349_v6  ;;  %323 = vmatpush3.bf16.msra.mxu1 %v350_v7 }
   0x8   :  { %314 = vmatprep.subr.bf16.mxu0 %v381_v3 }
   0x9   :  { %8 = vsyncpa [#allocation4], 0  ;;  %324 = vmatprep.subr.bf16.mxu1 %v381_v3  ;;  %v132_v11 = vsel %vm71_vm0, %v352_v9, 0  ;;  %vm382_vm1 = vmmov 0   ;;  %v25_v12 = vlaneseq  ;;  %vm67_vm4 = vcmask 326656   ;;  %v353_v18 = vld [vmem:[%s471_s2 + $0x28] sm:$0xff]  }
   0xa   :  { %316 = vmatprep.mubr.msk.bf16.mxu0 %vm382_vm1, %v381_v3  ;;  %326 = vmatprep.mubr.msk.bf16.mxu1 %vm382_vm1, %v381_v3  ;;  %v354_v20 = vld [vmem:[%s471_s2 + $0x30] sm:$0xff]   ;;  %v355_v21 = vld [vmem:[%s471_s2 + $0x38] ss:$0 sps:$4 sm:$0xff]   ;;  %vm20_vm5 = vcmask 261120   ;;  %v252_v43 = vld [vmem:[%s469_s0] sm:$0xff]  ;;  %s383_s7 = smov [#allocation3]  }
   0xb   :  { %315 = vmatpush3.bf16.msra.mxu0 %v73_v10  ;;  %325 = vmatpush3.bf16.msra.mxu1 %v132_v11  ;;  %v26_v13 = vand.u32 127, %v25_v12  ;;  %v197_v22 = vsel %vm71_vm0, %v355_v21, 0  ;;  %21 = vst.msk [vmem:[#allocation2] sm:$0xff] %vm20_vm5, %v381_v3  ;;  %22 = vst.msk [vmem:[#allocation2 + $0x8] sm:$0xff] %vm20_vm5, %v381_v3  ;;  %s265_s8 = sshll.u32 %s383_s7, 4  ;;  %v253_v44 = vld [vmem:[%s469_s0 + $0x8] sm:$0xff]  ;;  %s266_s8 = int_to_ptr.vmem [resolvable:$true] %s265_s8 }
   0xc   :  { %330 = vmatprep.subr.bf16.mxu0 %v381_v3  ;;  %s356_s11 = scalar_lea.vmem %s266_s8, 256  ;;  %p361_p1 = scmp.lt.s32.totalorder %s266_s8, %s266_s8 }
   0xd   :  { %p357_p0 = scmp.ne.s32.totalorder %s266_s8, %s356_s11  ;;  %p362_p2 = scmp.lt.s32.totalorder %s356_s11, %s356_s11 }
   0xf   :  { %p363_p3 = por %p362_p2, %p361_p1 }
  0x11   :  { %p364_p4 = pnand %p363_p3, %p357_p0 }
  0x12   :  { %v242_v34 = vld [vmem:[#allocation2] sm:$0xff]  ;;  %v243_v38 = vld [vmem:[#allocation2 + $0x8] sm:$0xff] }
  0x81   :  { %v32_v14 = vpop.permute.xlu0 %31 }
  0x82   :  { %vm36_vm2 = vcmp.eq.s32.totalorder %v32_v14, %v26_v13 }
  0x83   :  { %v38_v16 = vsel %vm36_vm2, 1.0, %v381_v3 }
  0x85   :  { %v35_v15 = vpop.permute.xlu0 %34 }
  0x86   :  { %vm37_vm3 = vcmp.eq.s32.totalorder %v35_v15, %v26_v13 }
  0x87   :  { %v39_v17 = vsel %vm37_vm3, 1.0, %v381_v3 }
  0x88   :  { %v40_v19 = vpack.c.bf16 %v39_v17, %v38_v16 }
  0x8a   :  { %317 = vmatmul.mubr.msk.bf16.vlgmr.msra.gmra.mrb[0].mxu0 %vm67_vm4, %v40_v19  ;;  %327 = vmatmul.mubr.msk.bf16.vlgmr.msra.gmra.mrb[0].mxu1 %vm67_vm4, %v40_v19 }
  0x8b   :  { %331 = vmatpush3.bf16.msra.mxu0 %v353_v18  ;;  %336 = vmatprep.mubr.msk.bf16.mxu0 %vm382_vm1, %v381_v3 }
  0x8c   :  { %332 = vmatprep.subr.bf16.mxu0 %v381_v3 }
  0x8f   :  { %333 = vmatpush3.bf16.msra.mxu0 %v354_v20 }
  0x90   :  { %334 = vmatprep.subr.bf16.mxu0 %v381_v3 }
  0x93   :  { %335 = vmatpush3.bf16.msra.mxu0 %v197_v22 }
  0x96   :  { %337 = vmatmul.mubr.msk.bf16.vlgmr.msra.gmra.mrb[4].mxu0 %vm67_vm4, %v40_v19 }
 0x15d   :  { %v109_v23 = vpop.f32.mrb[0].mxu0  ;;  %v168_v24 = vpop.f32.mrb[0].mxu1 }
 0x15e   :  { %v169_v25 = vadd.f32 %v168_v24, %v109_v23  ;;  %v318_v26 = vpop.f32.mrb[1].mxu0  ;;  %v328_v27 = vpop.f32.mrb[1].mxu1 }
 0x15f   :  { %v112_v28 = vpop.f32.mrb[2].mxu0  ;;  %v171_v29 = vpop.f32.mrb[2].mxu1 }
 0x160   :  { %v172_v30 = vadd.f32 %v171_v29, %v112_v28  ;;  %v319_v31 = vpop.f32.mrb[3].mxu0  ;;  %v329_v32 = vpop.f32.mrb[3].mxu1 }
 0x169   :  { %v233_v33 = vpop.f32.mrb[4].mxu0 }
 0x16a   :  { %v240_v35 = vadd.f32 %v233_v33, %v169_v25  ;;  %v338_v36 = vpop.f32.mrb[5].mxu0 }
 0x16b   :  { %v236_v37 = vpop.f32.mrb[6].mxu0 }
 0x16c   :  { %v244_v39 = vadd.f32 %v242_v34, %v240_v35  ;;  %v241_v40 = vadd.f32 %v236_v37, %v172_v30  ;;  %v339_v41 = vpop.f32.mrb[7].mxu0 }
 0x16e   :  { %247 = vst.msk [vmem:[#allocation2] sm:$0xff] %vm20_vm5, %v244_v39  ;;  %v245_v42 = vadd.f32 %v243_v38, %v241_v40 }
 0x170   :  { %248 = vst.msk [vmem:[#allocation2 + $0x8] sm:$0xff] %vm20_vm5, %v245_v42 }
 0x175   :  { %v254_v45 = vld [vmem:[#allocation2] sm:$0xff] }
 0x176   :  { %v256_v46 = vadd.f32 %v254_v45, %v252_v43 }
 0x177   :  { %v255_v47 = vld [vmem:[#allocation2 + $0x8] sm:$0xff] }
 0x178   :  { %v257_v48 = vadd.f32 %v255_v47, %v253_v44  ;;  %258 = vst.msk [vmem:[#allocation3] sm:$0xff] %vm20_vm5, %v256_v46 }
 0x17a   :  { %259 = vst.msk [vmem:[#allocation3 + $0x8] sm:$0xff] %vm20_vm5, %v257_v48 }
 0x17b   :  { %367 = shalt.err (!%p364_p4)
}
 0x17c   :  { %s368_s0 = scalar_lea.hbm %s472_s3, 256 }
 0x17d   :  { %p369_p5 = scmp.ne.s32.totalorder %s472_s3, %s368_s0  ;;  %p372_p6 = scmp.lt.u32.totalorder %s368_s0, %s472_s3 }
 0x17f   :  { %p374_p7 = pnand %p372_p6, %p369_p5 }
 0x181   :  { %377 = shalt.err (!%p374_p7)
}
 0x182   :  { %s384_s18 = smov 128   ;;  %s385_s19 = smov 8  }
 0x183   :  { %271 = dma.vmem_to_hbm [thread:$0]  %s266_s8, 256, %s472_s3, [#allocation4], %s384_s18, %s384_s18, %s385_s19  }
 0x184   :  { %378 = dma.done.wait [#allocation4], 256  }
 0x185   :  { %379 = vsyncadd [#allocation4], 4294967040 }
 0x186   :  { %275 = vsyncpa [#allocation4], 1 }

</bundles_post_ra>
